<compile_context>
chip_gen: v6e
topology: v6e:2x2x1
jax: 0.10.0
libtpu: 0.0.40
codegen_flags: <defaults>
</compile_context>

<pallas_src>
import functools

import jax
import jax.numpy as jnp
from jax.experimental import pallas as pl
from jax.experimental.pallas import tpu as pltpu


def dqn_kernel(x_ref, w1_ref, b1_ref, w2_ref, b2_ref, out_ref):
    # One batch tile per invocation: fc1 -> leaky_relu -> fc2, f32 accumulation.
    h = jnp.dot(x_ref[...], w1_ref[...], preferred_element_type=jnp.float32)
    h = h + b1_ref[...]
    # F.leaky_relu default negative_slope = 0.01 (computed in f32).
    h = jnp.where(h > 0, h, jnp.float32(0.01) * h)
    out = jnp.dot(h, w2_ref[...], preferred_element_type=jnp.float32)
    out_ref[...] = (out + b2_ref[...]).astype(out_ref.dtype)


_GRIDLESS_MAX_BATCH = 256   # below this, one un-tiled call is cheapest
_BATCH_TILE = 1024          # rows per pipelined grid step for large batches


@functools.partial(jax.jit, static_argnames=("batch_tile",))
def dqn_forward(x, w1_t, b1, w2_t, b2, *, batch_tile=_BATCH_TILE):
    """Forward pass.

    x:    [B, state_num]
    w1_t: [state_num, hidden]   fc1 weight, stored [in, out]
    b1:   [1, hidden]
    w2_t: [hidden, action_num]  fc2 weight, stored [in, out]
    b2:   [1, action_num]
    """
    batch, state_num = x.shape
    hidden = w1_t.shape[1]
    action_num = w2_t.shape[1]
    out_shape = jax.ShapeDtypeStruct((batch, action_num), x.dtype)

    if batch <= _GRIDLESS_MAX_BATCH:
        # Whole problem in one VMEM tile: pure latency regime, minimize ops.
        vmem = pl.BlockSpec(memory_space=pltpu.MemorySpace.VMEM)
        return pl.pallas_call(
            dqn_kernel,
            out_shape=out_shape,
            in_specs=[vmem] * 5,
            out_specs=vmem,
        )(x, w1_t, b1, w2_t, b2)

    # Pipelined batch grid: x/out tiles are double-buffered by Pallas, the
    # (tiny) weights and biases stay resident in VMEM across all steps.
    tb = min(batch_tile, batch)
    grid = (pl.cdiv(batch, tb),)
    # TODO(synk): for store-bound multi-thousand batches, emit lane-dense
    # (padded / transposed) logits instead of an action_num=2 last dim.
    return pl.pallas_call(
        dqn_kernel,
        out_shape=out_shape,
        grid_spec=pltpu.PrefetchScalarGridSpec(
            num_scalar_prefetch=0,
            grid=grid,
            in_specs=[
                pl.BlockSpec((tb, state_num), lambda i: (i, 0)),
                pl.BlockSpec((state_num, hidden), lambda i: (0, 0)),
                pl.BlockSpec((1, hidden), lambda i: (0, 0)),
                pl.BlockSpec((hidden, action_num), lambda i: (0, 0)),
                pl.BlockSpec((1, action_num), lambda i: (0, 0)),
            ],
            out_specs=pl.BlockSpec((tb, action_num), lambda i: (i, 0)),
        ),
        compiler_params=pltpu.CompilerParams(
            dimension_semantics=("parallel",)),  # v7x megacore sharding
    )(x, w1_t, b1, w2_t, b2)


def init_dqn_params(key, state_num, action_num, hidden_units_num,
                    dtype=jnp.float32):
    """nn.Linear default init (U[-1/sqrt(fan_in), 1/sqrt(fan_in)]), stored once
    in TPU layout so the forward wrapper needs no transposes/reshapes."""
    k1, k2, k3, k4 = jax.random.split(key, 4)
    bound1 = state_num ** -0.5
    bound2 = hidden_units_num ** -0.5
    w1_t = jax.random.uniform(k1, (state_num, hidden_units_num), dtype,
                              -bound1, bound1)
    b1 = jax.random.uniform(k2, (1, hidden_units_num), dtype, -bound1, bound1)
    w2_t = jax.random.uniform(k3, (hidden_units_num, action_num), dtype,
                              -bound2, bound2)
    b2 = jax.random.uniform(k4, (1, action_num), dtype, -bound2, bound2)
    return w1_t, b1, w2_t, b2


def params_from_torch_layout(w1, b1, w2, b2):
    """One-time conversion from PyTorch Linear layout ([out, in] weights,
    [out] biases) into the TPU layout used by dqn_forward."""
    return (jnp.transpose(w1), b1.reshape(1, -1),
            jnp.transpose(w2), b2.reshape(1, -1))


if __name__ == "__main__":
    # Kuhn poker NFSP sizes: state_num=7, action_num=2, hidden=32.
    state_num, action_num, hidden_units_num = 7, 2, 32

    key = jax.random.PRNGKey(0)
    kp, kx_small, kx_large = jax.random.split(key, 3)
    w1_t, b1, w2_t, b2 = init_dqn_params(kp, state_num, action_num,
                                         hidden_units_num)

    def ref_forward(x):
        h = x @ w1_t + b1
        h = jnp.where(h > 0, h, 0.01 * h)
        return h @ w2_t + b2

    # Small batch (online acting): gridless single-tile path.
    x_small = jax.random.normal(kx_small, (4, state_num), jnp.float32)
    out_small = jax.block_until_ready(dqn_forward(x_small, w1_t, b1, w2_t, b2))
    assert out_small.shape == (4, action_num)
    assert jnp.allclose(out_small, ref_forward(x_small), atol=1e-5, rtol=1e-5)

    # Replay-buffer batch, not a multiple of the tile -> pipelined grid with a
    # partial last block, weights resident across steps.
    x_large = jax.random.normal(kx_large, (2304, state_num), jnp.float32)
    out_large = jax.block_until_ready(
        dqn_forward(x_large, w1_t, b1, w2_t, b2, batch_tile=1024))
    assert out_large.shape == (2304, action_num)
    assert jnp.allclose(out_large, ref_forward(x_large), atol=1e-4, rtol=1e-4)

    print("KERNEL_OK")
</pallas_src>

<mosaic_0001>
module attributes {stable_mosaic.version = 11 : i64} {
  func.func @dqn_kernel(%arg0: memref<4x7xf32, #tpu.memory_space<vmem>>, %arg1: memref<7x32xf32, #tpu.memory_space<vmem>>, %arg2: memref<1x32xf32, #tpu.memory_space<vmem>>, %arg3: memref<32x2xf32, #tpu.memory_space<vmem>>, %arg4: memref<1x2xf32, #tpu.memory_space<vmem>>, %arg5: memref<4x2xf32, #tpu.memory_space<vmem>>) attributes {dimension_semantics = [], scalar_prefetch = 0 : i64, scratch_operands = 0 : i64, tpu.core_type = #tpu.core_type<tc>} {
    %c0 = arith.constant 0 : index
    %c0_0 = arith.constant 0 : index
    %0 = vector.load %arg0[%c0, %c0_0] : memref<4x7xf32, #tpu.memory_space<vmem>>, vector<4x7xf32>
    %c0_1 = arith.constant 0 : index
    %c0_2 = arith.constant 0 : index
    %1 = vector.load %arg1[%c0_1, %c0_2] : memref<7x32xf32, #tpu.memory_space<vmem>>, vector<7x32xf32>
    %cst = arith.constant dense<0.000000e+00> : vector<4x32xf32>
    %2 = tpu.matmul %0, %1, %cst {dimension_numbers = #tpu.dot_dimension_numbers<[1], [0], [0], [1], [0, 0, 1, 1], [], []>} : vector<4x7xf32>, vector<7x32xf32>, vector<4x32xf32> -> vector<4x32xf32>
    %c0_3 = arith.constant 0 : index
    %c0_4 = arith.constant 0 : index
    %3 = vector.load %arg2[%c0_3, %c0_4] : memref<1x32xf32, #tpu.memory_space<vmem>>, vector<1x32xf32>
    %4 = vector.broadcast %3 : vector<1x32xf32> to vector<4x32xf32>
    %5 = arith.addf %2, %4 : vector<4x32xf32>
    %cst_5 = arith.constant 0.000000e+00 : f32
    %6 = vector.broadcast %cst_5 : f32 to vector<4x32xf32>
    %7 = arith.cmpf ogt, %5, %6 : vector<4x32xf32>
    %cst_6 = arith.constant 0.00999999977 : f32
    %8 = vector.broadcast %cst_6 : f32 to vector<4x32xf32>
    %9 = arith.mulf %8, %5 : vector<4x32xf32>
    %10 = arith.select %7, %5, %9 : vector<4x32xi1>, vector<4x32xf32>
    %c0_7 = arith.constant 0 : index
    %c0_8 = arith.constant 0 : index
    %11 = vector.load %arg3[%c0_7, %c0_8] : memref<32x2xf32, #tpu.memory_space<vmem>>, vector<32x2xf32>
    %cst_9 = arith.constant dense<0.000000e+00> : vector<4x2xf32>
    %12 = tpu.matmul %10, %11, %cst_9 {dimension_numbers = #tpu.dot_dimension_numbers<[1], [0], [0], [1], [0, 0, 1, 1], [], []>} : vector<4x32xf32>, vector<32x2xf32>, vector<4x2xf32> -> vector<4x2xf32>
    %c0_10 = arith.constant 0 : index
    %c0_11 = arith.constant 0 : index
    %13 = vector.load %arg4[%c0_10, %c0_11] : memref<1x2xf32, #tpu.memory_space<vmem>>, vector<1x2xf32>
    %14 = vector.broadcast %13 : vector<1x2xf32> to vector<4x2xf32>
    %15 = arith.addf %12, %14 : vector<4x2xf32>
    %c0_12 = arith.constant 0 : index
    %c0_13 = arith.constant 0 : index
    %16 = vector.load %arg5[%c0_12, %c0_13] : memref<4x2xf32, #tpu.memory_space<vmem>>, vector<4x2xf32>
    tpu.vector_store %arg5[%c0_12, %c0_13], %15 {strides = array<i32>} : memref<4x2xf32, #tpu.memory_space<vmem>>, vector<4x2xf32>,
    return
  }
}

</mosaic_0001>

<bundles_post_ra>
// kernel: dqn_forward.1
= control target key start
LH: loop header
LB: loop body
LE: loop exit
PB: predicated region body
PF: predicated region fallthrough
CT: control target
= control target key end

     0   :  { %vm33_vm0 = vcmask 1046528   ;;  %vm29_vm1 = vcmask 56320   ;;  %v231_v0 = vmov 0.0   ;;  %vm232_vm2 = vmmov 0   ;;  %s290_s1 = inlined_call_operand.vmem [shape: f32[7,32], index: 1, kind: input, shape index: {}]   ;;  %s291_s0 = inlined_call_operand.vmem [shape: f32[4,7], index: 0, kind: input, shape index: {}]   ;;  %s292_s3 = inlined_call_operand.vmem [shape: f32[32,2], index: 3, kind: input, shape index: {}]   ;;  %s293_s2 = inlined_call_operand.vmem [shape: f32[1,32], index: 2, kind: input, shape index: {}]   ;;  %s294_s4 = inlined_call_operand.vmem [shape: f32[1,2], index: 4, kind: input, shape index: {}]   ;;  %s295_s5 = inlined_call_operand.vmem [shape: f32[4,2], index: 5, kind: output, shape index: {}]  }
   0x1   :  { %213 = vmatprep.subr.mxu0 %v231_v0  ;;  %v21_v1 = vld [vmem:[%s290_s1] sm:$0x7f]  ;;  %215 = vmatprep.mubr.msk.f32.mxu0 %vm232_vm2, %v231_v0  ;;  %v113_v3 = vld [vmem:[%s292_s3 + $0x18] sm:$0xff]  ;;  %v112_v4 = vld [vmem:[%s292_s3 + $0x10] sm:$0xff]  ;;  %vm121_vm4 = vcmask 261120   ;;  %vm195_vm5 = vcmask 11264  }
   0x2   :  { %v20_v2 = vld [vmem:[%s291_s0] sm:$0xf]  ;;  %214 = vmatpush3.msk.msra.mxu0 %vm33_vm0, %v21_v1  ;;  %218 = vmatprep.subr.mxu1 %v231_v0  ;;  %v111_v5 = vld [vmem:[%s292_s3 + $0x8] sm:$0xff] }
   0x3   :  { %216 = vmatmul.mubr.msk.f32.vlgmr.msra.gmra.mxu0 %vm29_vm1, %v20_v2  ;;  %219 = vmatpush3.msra.mxu1 %v113_v3  ;;  %v110_v6 = vld [vmem:[%s292_s3] sm:$0xff] }
   0x4   :  { %220 = vmatprep.subr.mxu1 %v231_v0  ;;  %226 = vmatprep.mubr.msk.f32.mxu1 %vm232_vm2, %v231_v0  ;;  %v201_v7 = vld [vmem:[%s293_s2] ss:$0 sm:$0xff] }
   0x5   :  { %221 = vmatpush3.msra.mxu1 %v112_v4  ;;  %v204_v13 = vld [vmem:[%s294_s4] ss:$0 sm:$0xff] }
   0x6   :  { %222 = vmatprep.subr.mxu1 %v231_v0 }
   0x7   :  { %223 = vmatpush3.msra.mxu1 %v111_v5 }
   0x8   :  { %224 = vmatprep.subr.mxu1 %v231_v0 }
   0x9   :  { %225 = vmatpush3.msra.mxu1 %v110_v6 }
  0xc3   :  { %v103_v8 = vpop.f32.mrf.mxu0 }
  0xc4   :  { %v104_v9 = vadd.f32 %v201_v7, %v103_v8 }
  0xc5   :  { %v217_v10 = vpop.f32.mrf.mxu0 }
  0xc6   :  { %vm107_vm3 = vcmp.gt.f32.partialorder %v104_v9, 0.0  ;;  %v108_v11 = vmul.f32 0.01, %v104_v9 }
  0xc8   :  { %v109_v12 = vsel %vm107_vm3, %v104_v9, %v108_v11 }
  0xc9   :  { %227 = vmatmul.mubr.msk.f32.vlgmr.msra.gmra.mxu1 %vm121_vm4, %v109_v12 }
 0x189   :  { %v191_v14 = vpop.f32.mrf.mxu1 }
 0x18a   :  { %v192_v15 = vadd.f32 %v204_v13, %v191_v14 }
 0x18b   :  { %v228_v16 = vpop.f32.mrf.mxu1 }
 0x18c   :  { %196 = vst.msk [vmem:[%s295_s5] sm:$0xf] %vm195_vm5, %v192_v15 }

</bundles_post_ra>
